<compile_context>
chip_gen: v7x
topology: tpu7x:2x2x1
jax: 0.10.0
libtpu: 0.0.40
codegen_flags: <defaults>
</compile_context>

<pallas_src>
import jax
import jax.numpy as jnp
from jax.experimental import pallas as pl
from jax.experimental.pallas import tpu as pltpu


def _round_up(x, m):
    return (x + m - 1) // m * m


def _make_kernel(H, W, TH, WP, NI, boxes):
    """boxes: tuple of (x1, y1, w, h) static Python ints."""

    def kernel(pred_ref, tgt_ref, out_ref, acc_ref):
        c = pl.program_id(0)   # parallel outer chunk (megacore / v7x dual-TC)
        i = pl.program_id(1)   # sequential row-tile inside the chunk

        @pl.when(i == 0)
        def _():
            acc_ref[...] = jnp.zeros_like(acc_ref)

        # Absolute row/col indices of this tile -> build the outside mask on the
        # VPU instead of streaming it from HBM.
        row0 = (c * NI + i) * TH
        rows = row0 + jax.lax.broadcasted_iota(jnp.int32, (TH, WP), 0)
        cols = jax.lax.broadcasted_iota(jnp.int32, (TH, WP), 1)

        inside = jnp.zeros((TH, WP), dtype=jnp.bool_)
        for (x1, y1, bw, bh) in boxes:
            inside = inside | ((rows >= y1) & (rows < y1 + bh)
                               & (cols >= x1) & (cols < x1 + bw))
        valid = (rows < H) & (cols < W)           # drop padded rows / cols
        m = jnp.where(valid & jnp.logical_not(inside),
                      jnp.float32(1.0), jnp.float32(0.0))

        # Target streamed as uint8; convert to f32 in-kernel (same math as the
        # PyTorch module: /255 * 4).  All arithmetic stays f32 (v5e has no bf16 VPU).
        tgt = tgt_ref[...].astype(jnp.float32) / 255.0 * 4.0
        d = pred_ref[...] - tgt
        sq = d * d * m

        # Lane-wise partial sums in VMEM: only a sublane reduce + VPU add per
        # step; no cross-lane XLU reduce / SMEM scalar round-trip in the loop.
        acc_ref[0] += jnp.sum(sq, axis=0, keepdims=True)
        acc_ref[1] += jnp.sum(m, axis=0, keepdims=True)

        @pl.when(i == NI - 1)
        def _():
            out_ref[0, 0] = jnp.sum(acc_ref[0])   # sum of squared diffs (outside)
            out_ref[0, 1] = jnp.sum(acc_ref[1])   # count of outside pixels

    return kernel


def outside_loss(pred, pred_image, bbox_target_list):
    """pred: (1, 1, H, W) float32 (NCHW). Returns scalar float32 loss."""
    H, W = int(pred.shape[-2]), int(pred.shape[-1])
    pred2d = pred.reshape(H, W).astype(jnp.float32)

    # Channel 0 if RGB; keep the HBM representation narrow (uint8).
    img = jnp.asarray(pred_image)
    if img.ndim == 3 and img.shape[2] == 3:
        img = img[..., 0]
    # TODO(synk): non-integer-valued float pred_image would need an f32 streaming path.
    tgt_u8 = img.astype(jnp.uint8).reshape(H, W)

    boxes = tuple(
        (int(it['boundingBox']['topLeftX']), int(it['boundingBox']['topLeftY']),
         int(it['boundingBox']['width']), int(it['boundingBox']['height']))
        for it in bbox_target_list)

    # Lane-dense layout: pad W up to a multiple of 128.
    WP = _round_up(max(W, 128), 128)
    # Row tile: ~1 MiB of f32 per block, multiple of 32 (native uint8 tiling).
    TH = max(32, ((1 << 20) // (WP * 4)) // 32 * 32)
    TH = min(TH, _round_up(H, 32))

    n_tiles = pl.cdiv(H, TH)
    NC = 2 if n_tiles >= 2 else 1          # outer parallel axis (both TCs on v7x)
    NI = pl.cdiv(n_tiles, NC)
    HP = NC * NI * TH

    pred_p = jnp.pad(pred2d, ((0, HP - H), (0, WP - W)))
    tgt_p = jnp.pad(tgt_u8, ((0, HP - H), (0, WP - W)))

    row_map = lambda c, i: (c * NI + i, 0)
    kernel = _make_kernel(H, W, TH, WP, NI, boxes)

    partials = pl.pallas_call(
        kernel,
        out_shape=jax.ShapeDtypeStruct((NC, 2), jnp.float32),
        grid=(NC, NI),
        in_specs=[pl.BlockSpec((TH, WP), row_map),     # pred, f32
                  pl.BlockSpec((TH, WP), row_map)],    # target image, uint8
        out_specs=pl.BlockSpec((1, 2), lambda c, i: (c, 0),
                               memory_space=pltpu.SMEM),
        scratch_shapes=[pltpu.VMEM((2, 1, WP), jnp.float32)],
        compiler_params=pltpu.CompilerParams(
            dimension_semantics=("parallel", "arbitrary"),
            vmem_limit_bytes=32 * 1024 * 1024),
    )(pred_p, tgt_p)

    # Combine the per-chunk partials (mean over outside pixels; NaN when the
    # boxes cover the whole image, matching torch MSELoss on empty tensors).
    return jnp.sum(partials[:, 0]) / jnp.sum(partials[:, 1])


if __name__ == "__main__":
    key = jax.random.PRNGKey(0)
    k1, k2 = jax.random.split(key)

    H, W = 16, 16
    pred = jax.random.normal(k1, (1, 1, H, W), dtype=jnp.float32)
    # synthetic "image" with integer values in [0, 255], RGB
    pred_image = jnp.floor(jax.random.uniform(k2, (H, W, 3), minval=0.0, maxval=256.0))

    bbox_target_list = [
        {'boundingBox': {'topLeftX': 2, 'topLeftY': 3, 'width': 5, 'height': 4}},
        {'boundingBox': {'topLeftX': 9, 'topLeftY': 8, 'width': 4, 'height': 6}},
    ]

    loss = outside_loss(pred, pred_image, bbox_target_list)
    loss = jax.block_until_ready(loss)

    # pure-JAX reference check (same semantics as the PyTorch module)
    img = jnp.asarray(pred_image, jnp.float32) / 255.0 * 4.0
    img = img[..., 0]
    rows = jnp.arange(H)[:, None]
    cols = jnp.arange(W)[None, :]
    inside = jnp.zeros((H, W), dtype=bool)
    for item in bbox_target_list:
        bb = item['boundingBox']
        x1, y1 = int(bb['topLeftX']), int(bb['topLeftY'])
        w, h = int(bb['width']), int(bb['height'])
        inside = inside | ((rows >= y1) & (rows < y1 + h) & (cols >= x1) & (cols < x1 + w))
    mask = (~inside).astype(jnp.float32)
    diff = pred.reshape(H, W) - img
    ref = jnp.sum(diff * diff * mask) / jnp.sum(mask)

    assert jnp.allclose(loss, ref, rtol=1e-5, atol=1e-6), (loss, ref)
    print("KERNEL_OK")
</pallas_src>

<mosaic_0001>
module attributes {stable_mosaic.version = 11 : i64} {
  func.func @kernel(%arg0: i32, %arg1: i32, %arg2: memref<32x128xf32, #tpu.memory_space<vmem>>, %arg3: memref<32x128xi8, #tpu.memory_space<vmem>>, %arg4: memref<1x2xf32, #tpu.memory_space<smem>>, %arg5: memref<2x1x128xf32, #tpu.memory_space<vmem>>) attributes {dimension_semantics = [#tpu.dimension_semantics<parallel>, #tpu.dimension_semantics<arbitrary>], iteration_bounds = array<i64: 1, 1>, scalar_prefetch = 0 : i64, scratch_operands = 1 : i64, tpu.core_type = #tpu.core_type<tc>, window_params = [{transform_indices = @transform_0, window_bounds = array<i64: 32, 128>}, {transform_indices = @transform_1, window_bounds = array<i64: 32, 128>}, {transform_indices = @transform_2, window_bounds = array<i64: 1, 2>}]} {
    %c0_i32 = arith.constant 0 : i32
    %0 = arith.cmpi eq, %arg1, %c0_i32 : i32
    %1 = arith.extui %0 : i1 to i32
    %c0_i32_0 = arith.constant 0 : i32
    %2 = arith.cmpi ne, %1, %c0_i32_0 : i32
    scf.if %2 {
      %cst_25 = arith.constant 0.000000e+00 : f32
      %74 = vector.broadcast %cst_25 : f32 to vector<2x1x128xf32>
      %c0_26 = arith.constant 0 : index
      %c0_27 = arith.constant 0 : index
      %c0_28 = arith.constant 0 : index
      %75 = vector.load %arg5[%c0_26, %c0_27, %c0_28] : memref<2x1x128xf32, #tpu.memory_space<vmem>>, vector<2x1x128xf32>
      tpu.vector_store %arg5[%c0_26, %c0_27, %c0_28], %74 {strides = array<i32>} : memref<2x1x128xf32, #tpu.memory_space<vmem>>, vector<2x1x128xf32>,
    } else {
    }
    %c1_i32 = arith.constant 1 : i32
    %3 = arith.muli %arg0, %c1_i32 : i32
    %4 = arith.addi %3, %arg1 : i32
    %c32_i32 = arith.constant 32 : i32
    %5 = arith.muli %4, %c32_i32 : i32
    %6 = tpu.iota {dimensions = array<i32: 0>} : vector<32x128xi32>
    %7 = vector.broadcast %5 : i32 to vector<32x128xi32>
    %8 = arith.addi %7, %6 : vector<32x128xi32>
    %9 = tpu.iota {dimensions = array<i32: 1>} : vector<32x128xi32>
    %false = arith.constant false
    %10 = vector.broadcast %false : i1 to vector<32x128xi1>
    %c3_i32 = arith.constant 3 : i32
    %11 = vector.broadcast %c3_i32 : i32 to vector<32x128xi32>
    %12 = arith.cmpi sge, %8, %11 : vector<32x128xi32>
    %c7_i32 = arith.constant 7 : i32
    %13 = vector.broadcast %c7_i32 : i32 to vector<32x128xi32>
    %14 = arith.cmpi slt, %8, %13 : vector<32x128xi32>
    %15 = arith.andi %12, %14 : vector<32x128xi1>
    %c2_i32 = arith.constant 2 : i32
    %16 = vector.broadcast %c2_i32 : i32 to vector<32x128xi32>
    %17 = arith.cmpi sge, %9, %16 : vector<32x128xi32>
    %18 = arith.andi %15, %17 : vector<32x128xi1>
    %c7_i32_1 = arith.constant 7 : i32
    %19 = vector.broadcast %c7_i32_1 : i32 to vector<32x128xi32>
    %20 = arith.cmpi slt, %9, %19 : vector<32x128xi32>
    %21 = arith.andi %18, %20 : vector<32x128xi1>
    %22 = arith.ori %10, %21 : vector<32x128xi1>
    %c8_i32 = arith.constant 8 : i32
    %23 = vector.broadcast %c8_i32 : i32 to vector<32x128xi32>
    %24 = arith.cmpi sge, %8, %23 : vector<32x128xi32>
    %c14_i32 = arith.constant 14 : i32
    %25 = vector.broadcast %c14_i32 : i32 to vector<32x128xi32>
    %26 = arith.cmpi slt, %8, %25 : vector<32x128xi32>
    %27 = arith.andi %24, %26 : vector<32x128xi1>
    %c9_i32 = arith.constant 9 : i32
    %28 = vector.broadcast %c9_i32 : i32 to vector<32x128xi32>
    %29 = arith.cmpi sge, %9, %28 : vector<32x128xi32>
    %30 = arith.andi %27, %29 : vector<32x128xi1>
    %c13_i32 = arith.constant 13 : i32
    %31 = vector.broadcast %c13_i32 : i32 to vector<32x128xi32>
    %32 = arith.cmpi slt, %9, %31 : vector<32x128xi32>
    %33 = arith.andi %30, %32 : vector<32x128xi1>
    %34 = arith.ori %22, %33 : vector<32x128xi1>
    %c16_i32 = arith.constant 16 : i32
    %35 = vector.broadcast %c16_i32 : i32 to vector<32x128xi32>
    %36 = arith.cmpi slt, %8, %35 : vector<32x128xi32>
    %c16_i32_2 = arith.constant 16 : i32
    %37 = vector.broadcast %c16_i32_2 : i32 to vector<32x128xi32>
    %38 = arith.cmpi slt, %9, %37 : vector<32x128xi32>
    %39 = arith.andi %36, %38 : vector<32x128xi1>
    %cst = arith.constant dense<true> : vector<32x128xi1>
    %40 = arith.xori %34, %cst : vector<32x128xi1>
    %41 = arith.andi %39, %40 : vector<32x128xi1>
    %cst_3 = arith.constant 1.000000e+00 : f32
    %cst_4 = arith.constant 0.000000e+00 : f32
    %42 = vector.broadcast %cst_3 : f32 to vector<32x128xf32>
    %43 = vector.broadcast %cst_4 : f32 to vector<32x128xf32>
    %44 = arith.select %41, %42, %43 : vector<32x128xi1>, vector<32x128xf32>
    %c0 = arith.constant 0 : index
    %c0_5 = arith.constant 0 : index
    %45 = vector.load %arg3[%c0, %c0_5] : memref<32x128xi8, #tpu.memory_space<vmem>>, vector<32x128xi8>
    %46 = arith.uitofp %45 : vector<32x128xi8> to vector<32x128xf32>
    %cst_6 = arith.constant 2.550000e+02 : f32
    %47 = vector.broadcast %cst_6 : f32 to vector<32x128xf32>
    %48 = arith.divf %46, %47 : vector<32x128xf32>
    %cst_7 = arith.constant 4.000000e+00 : f32
    %49 = vector.broadcast %cst_7 : f32 to vector<32x128xf32>
    %50 = arith.mulf %48, %49 : vector<32x128xf32>
    %c0_8 = arith.constant 0 : index
    %c0_9 = arith.constant 0 : index
    %51 = vector.load %arg2[%c0_8, %c0_9] : memref<32x128xf32, #tpu.memory_space<vmem>>, vector<32x128xf32>
    %52 = arith.subf %51, %50 : vector<32x128xf32>
    %53 = arith.mulf %52, %52 : vector<32x128xf32>
    %54 = arith.mulf %53, %44 : vector<32x128xf32>
    %c0_10 = arith.constant 0 : index
    %c0_11 = arith.constant 0 : index
    %c0_12 = arith.constant 0 : index
    %55 = vector.load %arg5[%c0_10, %c0_11, %c0_12] : memref<2x1x128xf32, #tpu.memory_space<vmem>>, vector<1x1x128xf32>
    %56 = vector.shape_cast %55 : vector<1x1x128xf32> to vector<1x128xf32>
    %cst_13 = arith.constant dense<0.000000e+00> : vector<128xf32>
    %57 = vector.multi_reduction <add>, %54, %cst_13 [0] : vector<32x128xf32> to vector<128xf32>
    %58 = vector.shape_cast %57 : vector<128xf32> to vector<1x128xf32>
    %59 = arith.addf %56, %58 : vector<1x128xf32>
    %c0_14 = arith.constant 0 : index
    %c0_15 = arith.constant 0 : index
    %c0_16 = arith.constant 0 : index
    %60 = vector.load %arg5[%c0_14, %c0_15, %c0_16] : memref<2x1x128xf32, #tpu.memory_space<vmem>>, vector<1x1x128xf32>
    %61 = vector.shape_cast %60 : vector<1x1x128xf32> to vector<1x128xf32>
    %62 = vector.shape_cast %59 : vector<1x128xf32> to vector<1x1x128xf32>
    tpu.vector_store %arg5[%c0_14, %c0_15, %c0_16], %62 {strides = array<i32>} : memref<2x1x128xf32, #tpu.memory_space<vmem>>, vector<1x1x128xf32>,
    %c1 = arith.constant 1 : index
    %c0_17 = arith.constant 0 : index
    %c0_18 = arith.constant 0 : index
    %63 = vector.load %arg5[%c1, %c0_17, %c0_18] : memref<2x1x128xf32, #tpu.memory_space<vmem>>, vector<1x1x128xf32>
    %64 = vector.shape_cast %63 : vector<1x1x128xf32> to vector<1x128xf32>
    %cst_19 = arith.constant dense<0.000000e+00> : vector<128xf32>
    %65 = vector.multi_reduction <add>, %44, %cst_19 [0] : vector<32x128xf32> to vector<128xf32>
    %66 = vector.shape_cast %65 : vector<128xf32> to vector<1x128xf32>
    %67 = arith.addf %64, %66 : vector<1x128xf32>
    %c1_20 = arith.constant 1 : index
    %c0_21 = arith.constant 0 : index
    %c0_22 = arith.constant 0 : index
    %68 = vector.load %arg5[%c1_20, %c0_21, %c0_22] : memref<2x1x128xf32, #tpu.memory_space<vmem>>, vector<1x1x128xf32>
    %69 = vector.shape_cast %68 : vector<1x1x128xf32> to vector<1x128xf32>
    %70 = vector.shape_cast %67 : vector<1x128xf32> to vector<1x1x128xf32>
    tpu.vector_store %arg5[%c1_20, %c0_21, %c0_22], %70 {strides = array<i32>} : memref<2x1x128xf32, #tpu.memory_space<vmem>>, vector<1x1x128xf32>,
    %c0_i32_23 = arith.constant 0 : i32
    %71 = arith.cmpi eq, %arg1, %c0_i32_23 : i32
    %72 = arith.extui %71 : i1 to i32
    %c0_i32_24 = arith.constant 0 : i32
    %73 = arith.cmpi ne, %72, %c0_i32_24 : i32
    scf.if %73 {
      %c0_25 = arith.constant 0 : index
      %c0_26 = arith.constant 0 : index
      %c0_27 = arith.constant 0 : index
      %74 = vector.load %arg5[%c0_25, %c0_26, %c0_27] : memref<2x1x128xf32, #tpu.memory_space<vmem>>, vector<1x1x128xf32>
      %75 = vector.shape_cast %74 : vector<1x1x128xf32> to vector<1x128xf32>
      %76 = vector.shape_cast %75 : vector<1x128xf32> to vector<1x1x128xf32>
      %cst_28 = arith.constant dense<0.000000e+00> : vector<1xf32>
      %77 = vector.multi_reduction <add>, %76, %cst_28 [1, 2] : vector<1x1x128xf32> to vector<1xf32>
      %78 = vector.shape_cast %77 : vector<1xf32> to vector<1x1x1xf32>
      %79 = vector.extract %78[0, 0, 0] : f32 from vector<1x1x1xf32>
      %c0_29 = arith.constant 0 : index
      %c0_30 = arith.constant 0 : index
      %80 = memref.load %arg4[%c0_29, %c0_30] : memref<1x2xf32, #tpu.memory_space<smem>>
      memref.store %79, %arg4[%c0_29, %c0_30] : memref<1x2xf32, #tpu.memory_space<smem>>
      %c1_31 = arith.constant 1 : index
      %c0_32 = arith.constant 0 : index
      %c0_33 = arith.constant 0 : index
      %81 = vector.load %arg5[%c1_31, %c0_32, %c0_33] : memref<2x1x128xf32, #tpu.memory_space<vmem>>, vector<1x1x128xf32>
      %82 = vector.shape_cast %81 : vector<1x1x128xf32> to vector<1x128xf32>
      %83 = vector.shape_cast %82 : vector<1x128xf32> to vector<1x1x128xf32>
      %cst_34 = arith.constant dense<0.000000e+00> : vector<1xf32>
      %84 = vector.multi_reduction <add>, %83, %cst_34 [1, 2] : vector<1x1x128xf32> to vector<1xf32>
      %85 = vector.shape_cast %84 : vector<1xf32> to vector<1x1x1xf32>
      %86 = vector.extract %85[0, 0, 0] : f32 from vector<1x1x1xf32>
      %c0_35 = arith.constant 0 : index
      %c1_36 = arith.constant 1 : index
      %87 = memref.load %arg4[%c0_35, %c1_36] : memref<1x2xf32, #tpu.memory_space<smem>>
      memref.store %86, %arg4[%c0_35, %c1_36] : memref<1x2xf32, #tpu.memory_space<smem>>
    } else {
    }
    return
  }
  func.func @transform_0(%arg0: i32, %arg1: i32) -> (i32, i32) {
    %c1_i32 = arith.constant 1 : i32
    %0 = arith.muli %arg0, %c1_i32 : i32
    %1 = arith.addi %0, %arg1 : i32
    %c0_i32 = arith.constant 0 : i32
    %c0_i32_0 = arith.constant 0 : i32
    return %1, %c0_i32 : i32, i32
  }
  func.func @transform_1(%arg0: i32, %arg1: i32) -> (i32, i32) {
    %c1_i32 = arith.constant 1 : i32
    %0 = arith.muli %arg0, %c1_i32 : i32
    %1 = arith.addi %0, %arg1 : i32
    %c0_i32 = arith.constant 0 : i32
    %c0_i32_0 = arith.constant 0 : i32
    return %1, %c0_i32 : i32, i32
  }
  func.func @transform_2(%arg0: i32, %arg1: i32) -> (i32, i32) {
    %c0_i32 = arith.constant 0 : i32
    %c0_i32_0 = arith.constant 0 : i32
    return %arg0, %c0_i32 : i32, i32
  }
}

</mosaic_0001>

<bundles_post_ra>
// kernel: tpu_custom_call.1
= control target key start
LH: loop header
LB: loop body
LE: loop exit
PB: predicated region body
PF: predicated region fallthrough
CT: control target
= control target key end

     0   :  { %7 = vsyncpa [#allocation4], 0  ;;  %s374_s0 = inlined_call_operand.hbm [shape: f32[32,128], index: 0, kind: input, shape index: {}]   ;;  %s375_s1 = inlined_call_operand.hbm [shape: u8[32,128], index: 1, kind: input, shape index: {}]   ;;  %s376_s2 = inlined_call_operand.hbm [shape: f32[1,2], index: 2, kind: output, shape index: {}]  }
   0x1   :  { %8 = vsyncpa [#allocation7], 0 }
   0x2   :  { %9 = vsyncpa [#allocation5], 0  ;;  %s316_s9 = smov [#allocation3]   ;;  %s256_s13 = scalar_lea.hbm %s374_s0, 512 }
   0x3   :  { %s19_s10 = sshll.u32 %s316_s9, 4  ;;  %p257_p0 = scmp.ne.s32.totalorder %s374_s0, %s256_s13  ;;  %s20_s10 = int_to_ptr.vmem [resolvable:$true] %s19_s10 }
   0x4   :  { %p260_p1 = scmp.lt.u32.totalorder %s256_s13, %s374_s0 }
   0x6   :  { %p262_p2 = pnand %p260_p1, %p257_p0 }
   0x8   :  { %265 = shalt.err (!%p262_p2)
}
   0x9   :  { %s266_s18 = scalar_lea.vmem %s20_s10, 512  ;;  %p271_p4 = scmp.lt.s32.totalorder %s20_s10, %s20_s10 }
   0xa   :  { %p267_p3 = scmp.ne.s32.totalorder %s20_s10, %s266_s18  ;;  %p272_p5 = scmp.lt.s32.totalorder %s266_s18, %s266_s18 }
   0xc   :  { %p273_p6 = por %p272_p5, %p271_p4 }
   0xe   :  { %p274_p7 = pnand %p273_p6, %p267_p3 }
  0x10   :  { %277 = shalt.err (!%p274_p7)
}
  0x11   :  { %s317_s19 = smov 128   ;;  %s318_s20 = smov 8  }
  0x12   :  { %25 = dma.hbm_to_vmem [thread:$0]  %s374_s0, 512, %s20_s10, [#allocation4], %s317_s19, %s317_s19, %s318_s20  }
  0x13   :  { %s319_s23 = smov [#allocation6]   ;;  %s278_s27 = scalar_lea.hbm %s375_s1, 128 }
  0x14   :  { %s35_s24 = sshll.u32 %s319_s23, 4  ;;  %p279_p8 = scmp.ne.s32.totalorder %s375_s1, %s278_s27  ;;  %s36_s24 = int_to_ptr.vmem [resolvable:$true] %s35_s24 }
  0x15   :  { %p282_p9 = scmp.lt.u32.totalorder %s278_s27, %s375_s1 }
  0x17   :  { %p284_p10 = pnand %p282_p9, %p279_p8 }
  0x19   :  { %287 = shalt.err (!%p284_p10)
}
  0x1a   :  { %s288_s4 = scalar_lea.vmem %s36_s24, 128  ;;  %p293_p12 = scmp.lt.s32.totalorder %s36_s24, %s36_s24 }
  0x1b   :  { %p289_p11 = scmp.ne.s32.totalorder %s36_s24, %s288_s4  ;;  %p294_p13 = scmp.lt.s32.totalorder %s288_s4, %s288_s4 }
  0x1d   :  { %p295_p0 = por %p294_p13, %p293_p12 }
  0x1f   :  { %p296_p1 = pnand %p295_p0, %p289_p11 }
  0x21   :  { %299 = shalt.err (!%p296_p1)
}
  0x22   :  { %38 = dma.hbm_to_vmem [thread:$0]  %s375_s1, 128, %s36_s24, [#allocation7]  }
  0x23   :  { %310 = dma.done.wait [#allocation4], 512  }
  0x24   :  { %311 = vsyncadd [#allocation4], 4294966784 }
  0x25   :  { %312 = dma.done.wait [#allocation7], 128  }
  0x26   :  { %313 = vsyncadd [#allocation7], 4294967168  ;;  %v56_v0 = vlaneseq  ;;  %v320_v1 = vmov 0.0   ;;  %v137_v5 = vld [vmem:[#allocation6] sm:$0xff]  ;;  %vm321_vm13 = vmmov 1   ;;  %v160_v25 = vld [vmem:[#allocation3 + $0x8] sm:$0xff] }
  0x27   :  { %52 = vst [vmem:[#allocation2] sm:$0x1] %v320_v1  ;;  %53 = vst [vmem:[#allocation2 + $0x1] sm:$0x1] %v320_v1  ;;  %v138_v6 = vunpack.c.0.s8 %v137_v5  ;;  %v139_v7 = vunpack.c.1.s8 %v137_v5  ;;  %v140_v8 = vunpack.c.2.s8 %v137_v5  ;;  %v141_v9 = vunpack.c.3.s8 %v137_v5  ;;  %v159_v24 = vld [vmem:[#allocation3] sm:$0xff]  ;;  %v161_v29 = vld [vmem:[#allocation3 + $0x10] sm:$0xff] }
  0x28   :  { %v57_v2 = vshrl.u32 %v56_v0, 7  ;;  %v67_v3 = vand.u32 127, %v56_v0  ;;  %v162_v30 = vld [vmem:[#allocation3 + $0x18] sm:$0xff]  ;;  %s300_s9 = scalar_lea.hbm %s376_s2, 16 }
  0x29   :  { %v142_v10 = vand.u32 255, %v138_v6  ;;  %v143_v11 = vand.u32 255, %v139_v7  ;;  %v144_v12 = vand.u32 255, %v140_v8  ;;  %v145_v13 = vand.u32 255, %v141_v9  ;;  %p301_p2 = scmp.ne.s32.totalorder %s376_s2, %s300_s9  ;;  %p304_p3 = scmp.lt.u32.totalorder %s300_s9, %s376_s2 }
  0x2a   :  { %v58_v4 = vadd.s32 8, %v57_v2  ;;  %vm68_vm0 = vcmp.ge.s32.totalorder %v57_v2, 3  ;;  %vm72_vm1 = vcmp.lt.s32.totalorder %v57_v2, 7  ;;  %vm80_vm2 = vcmp.ge.s32.totalorder %v67_v3, 2 }
  0x2b   :  { %vm76_vm3 = vmand %vm68_vm0, %vm72_vm1  ;;  %vm85_vm4 = vcmp.lt.s32.totalorder %v67_v3, 7  ;;  %vm102_vm5 = vcmp.ge.s32.totalorder %v67_v3, 9  ;;  %vm107_vm8 = vcmp.lt.s32.totalorder %v67_v3, 13  ;;  %vm120_vm12 = vcmp.lt.s32.totalorder %v67_v3, 16  ;;  %p306_p4 = pnand %p304_p3, %p301_p2 }
  0x2c   :  { %vm81_vm6 = vmand %vm76_vm3, %vm80_vm2  ;;  %vm95_vm7 = vcmp.lt.s32.totalorder %v58_v4, 14  ;;  %v146_v14 = vcvt.s32.f32 %v142_v10  ;;  %v147_v15 = vcvt.s32.f32 %v143_v11  ;;  %v148_v16 = vcvt.s32.f32 %v144_v12 }
  0x2d   :  { %vm86_vm9 = vmand %vm81_vm6, %vm85_vm4  ;;  %v149_v17 = vcvt.s32.f32 %v145_v13  ;;  %vm204_vm2 = vcmask 1040384  }
  0x2e   :  { %vm104_vm10 = vmand %vm95_vm7, %vm102_vm5  ;;  %v151_v20 = vmul.f32 0.003921569, %v146_v14  ;;  %v152_v21 = vmul.f32 0.003921569, %v147_v15  ;;  %v153_v22 = vmul.f32 0.003921569, %v148_v16 }
  0x2f   :  { %vm109_vm11 = vmand %vm104_vm10, %vm107_vm8  ;;  %v154_v23 = vmul.f32 0.003921569, %v149_v17  ;;  %v188_v52 = vld [vmem:[#allocation2 + $0x1] sm:$0x1]  ;;  %v175_v61 = vld [vmem:[#allocation2] sm:$0x1] }
  0x30   :  { %vm125_vm14 = vmxor %vm86_vm9, %vm321_vm13  ;;  %v155_v27 = vmul.f32 4.0, %v151_v20  ;;  %v156_v28 = vmul.f32 4.0, %v152_v21  ;;  %v157_v31 = vmul.f32 4.0, %v153_v22 }
  0x31   :  { %vm126_vm15 = vmxor %vm109_vm11, %vm321_vm13  ;;  %v158_v32 = vmul.f32 4.0, %v154_v23 }
  0x32   :  { %vm129_vm0 = vmand %vm120_vm12, %vm125_vm14  ;;  %v163_v34 = vsub.f32 %v159_v24, %v155_v27  ;;  %v164_v35 = vsub.f32 %v160_v25, %v156_v28  ;;  %v165_v36 = vsub.f32 %v161_v29, %v157_v31 }
  0x33   :  { %vm130_vm1 = vmand %vm120_vm12, %vm126_vm15  ;;  %v133_v18 = vsel %vm129_vm0, 1.0, %v320_v1  ;;  %v166_v37 = vsub.f32 %v162_v30, %v158_v32 }
  0x34   :  { %v134_v19 = vsel %vm130_vm1, 1.0, %v320_v1  ;;  %v167_v39 = vmul.f32 %v163_v34, %v163_v34  ;;  %v168_v40 = vmul.f32 %v164_v35, %v164_v35  ;;  %v169_v41 = vmul.f32 %v165_v36, %v165_v36 }
  0x35   :  { %v189_v26 = vadd.f32 %v134_v19, %v133_v18  ;;  %v170_v42 = vmul.f32 %v166_v37, %v166_v37 }
  0x36   :  { %v171_v44 = vmul.f32 %v167_v39, %v133_v18  ;;  %v172_v45 = vmul.f32 %v168_v40, %v134_v19  ;;  %v173_v46 = vmul.f32 0.0, %v169_v41 }
  0x37   :  { %v192_v33 = vrot.slane %v189_v26, 4  ;;  %v174_v48 = vmul.f32 0.0, %v170_v42 }
  0x38   :  { %v176_v49 = vadd.f32 %v172_v45, %v171_v44 }
  0x39   :  { %v193_v38 = vadd.f32 %v192_v33, %v189_v26 }
  0x3a   :  { %v177_v51 = vadd.f32 %v176_v49, %v173_v46 }
  0x3b   :  { %v194_v43 = vrot.slane %v193_v38, 2 }
  0x3c   :  { %v178_v54 = vadd.f32 %v177_v51, %v174_v48 }
  0x3d   :  { %v195_v47 = vadd.f32 %v194_v43, %v193_v38 }
  0x3e   :  { %v179_v56 = vrot.slane %v178_v54, 4 }
  0x3f   :  { %v196_v50 = vrot.slane %v195_v47, 1 }
  0x40   :  { %v180_v57 = vadd.f32 %v179_v56, %v178_v54 }
  0x41   :  { %v197_v53 = vadd.f32 %v196_v50, %v195_v47 }
  0x42   :  { %v181_v58 = vrot.slane %v180_v57, 2 }
  0x43   :  { %v198_v55 = vadd.f32 %v197_v53, %v188_v52 }
  0x44   :  { %v182_v59 = vadd.f32 %v181_v58, %v180_v57 }
  0x45   :  { %199 = vst [vmem:[#allocation2 + $0x1] sm:$0x1] %v198_v55 }
  0x46   :  { %v183_v60 = vrot.slane %v182_v59, 1 }
  0x48   :  { %v184_v62 = vadd.f32 %v183_v60, %v182_v59 }
  0x4a   :  { %v185_v63 = vadd.f32 %v184_v62, %v175_v61 }
  0x4c   :  { %186 = vst [vmem:[#allocation2] sm:$0x1] %v185_v63  ;;  %v217_v1 = vld [vmem:[#allocation2 + $0x1] sm:$0x1] }
  0x4d   :  { %v218_v3 = vsel %vm204_vm2, %v217_v1, 0.0 }
  0x53   :  { %v203_v0 = vld [vmem:[#allocation2] sm:$0x1] }
  0x54   :  { %v205_v2 = vsel %vm204_vm2, %v203_v0, 0.0 }
  0x55   :  { %206 = vadd.xlane.f32.xlu0 %v205_v2 }
  0x59   :  { %219 = vadd.xlane.f32.xlu0 %v218_v3 }
  0xe2   :  { %v207_v4 = vpop.xlane.xlu0 %206 }
  0xe3   :  { %v208_v5 = vrot.slane %v207_v4, 4 }
  0xe5   :  { %v209_v6 = vadd.f32 %v208_v5, %v207_v4 }
  0xe6   :  { %v220_v7 = vpop.xlane.xlu0 %219 }
  0xe7   :  { %v210_v8 = vrot.slane %v209_v6, 2  ;;  %v221_v9 = vrot.slane %v220_v7, 4 }
  0xe9   :  { %v222_v10 = vadd.f32 %v221_v9, %v220_v7  ;;  %v211_v11 = vadd.f32 %v210_v8, %v209_v6 }
  0xeb   :  { %v223_v12 = vrot.slane %v222_v10, 2  ;;  %v212_v13 = vrot.slane %v211_v11, 1 }
  0xed   :  { %v224_v14 = vadd.f32 %v223_v12, %v222_v10  ;;  %v213_v15 = vadd.f32 %v212_v13, %v211_v11 }
  0xef   :  { %245 = vpush %v213_v15  ;;  %v225_v16 = vrot.slane %v224_v14, 1 }
  0xf1   :  { %v226_v17 = vadd.f32 %v225_v16, %v224_v14 }
  0xf3   :  { %247 = vpush %v226_v17 }
 0x120   :  { %s246_s1 = spop %245 }
 0x121   :  { %216 = sst [smem:[#allocation8]] %s246_s1 }
 0x124   :  { %s248_s6 = spop %247 }
 0x125   :  { %229 = sst [smem:[#allocation8 + $0x1]] %s248_s6 }
 0x126   :  { %309 = shalt.err (!%p306_p4)
}
 0x127   :  { %s322_s14 = smov [#allocation8]  }
 0x128   :  { %237 = dma.smem_to_hbm %s322_s14, 16, %s376_s2, [#allocation5]  }
 0x129   :  { %314 = dma.done.wait [#allocation5], 16  }
 0x12a   :  { %315 = vsyncadd [#allocation5], 4294967280 }
 0x12b   :  { %241 = sfence }
 0x12c   :  { %242 = vsyncpa [#allocation4], 1 }
 0x12d   :  { %243 = vsyncpa [#allocation7], 1 }
 0x12e   :  { %244 = vsyncpa [#allocation5], 1 }

</bundles_post_ra>
